<compile_context>
chip_gen: v7x
topology: tpu7x:2x2x1
jax: 0.10.0
libtpu: 0.0.40
codegen_flags: <defaults>
</compile_context>

<pallas_src>
import functools

import jax
import jax.numpy as jnp
from jax.experimental import pallas as pl
from jax.experimental.pallas import tpu as pltpu


# ---------------------------------------------------------------------------
# Tiling helpers
# ---------------------------------------------------------------------------
def _pick_hw_tile(hw, cap=2048):
    """Largest multiple-of-128 divisor of hw (<= cap); lane-dense tiles."""
    best = None
    t = 128
    while t <= min(hw, cap):
        if hw % t == 0:
            best = t
        t += 128
    # No multiple-of-128 divisor: full-extent block along HW (always legal).
    return best if best is not None else hw


def _pick_c_block(c, itemsize, cap=256):
    """Largest multiple-of-sublane-packing divisor of C (<= cap); otherwise
    full C (full-extent block is always legal)."""
    sub = {4: 8, 2: 16, 1: 32}.get(itemsize, 8)
    best = None
    b = sub
    while b <= min(c, cap):
        if c % b == 0:
            best = b
        b += sub
    return best if best is not None else c


# ---------------------------------------------------------------------------
# Pallas kernels
# ---------------------------------------------------------------------------
def _bn_stats_kernel(x_ref, mean_ref, var_ref, acc_sum, acc_sq, *, inv_l):
    """Per-channel mean / biased variance.

    Grid: (C blocks [parallel], N [arbitrary], HW tiles [arbitrary]).
    x_ref: (c_blk, hw_tile).  Outputs (c_blk, 1), written once in finalize.
    Inner loop is pure VPU (per-lane partial sums); the cross-lane (XLU)
    reduce happens a single time per channel block.
    """
    inner = pl.program_id(1) * pl.num_programs(2) + pl.program_id(2)
    n_inner = pl.num_programs(1) * pl.num_programs(2)

    x = x_ref[...].astype(jnp.float32)

    @pl.when(inner == 0)
    def _():  # first tile: direct write, no zero-fill pass over scratch
        acc_sum[...] = x
        acc_sq[...] = x * x

    @pl.when(inner > 0)
    def _():
        acc_sum[...] += x
        acc_sq[...] += x * x

    @pl.when(inner == n_inner - 1)
    def _():
        mu = jnp.sum(acc_sum[...], axis=1, keepdims=True) * inv_l
        ex2 = jnp.sum(acc_sq[...], axis=1, keepdims=True) * inv_l
        mean_ref[...] = mu
        var_ref[...] = jnp.maximum(ex2 - mu * mu, 0.0)  # biased variance


def _bn_apply_kernel(x_ref, scale_ref, shift_ref, o_ref):
    """y = x * scale + shift.  x_ref/o_ref: (c_blk, hw_tile); scale/shift:
    (c_blk, 1), VMEM-resident (same block) across the inner grid axes."""
    x = x_ref[...].astype(jnp.float32)
    o_ref[...] = (x * scale_ref[...] + shift_ref[...]).astype(o_ref.dtype)


# ---------------------------------------------------------------------------
# Python wrapper (timestep selection, tiny per-channel glue, EMA update)
# ---------------------------------------------------------------------------
def batch_norm_forward(x, state, t, training=True):
    """Forward pass of _BatchNorm.

    Args:
      x: (N, C, H, W) input (NCHW, PyTorch conv layout).
      state: dict with 'bn_opts', 'weight', 'bias', 'running_mean',
             'running_var', 'num_batches_tracked', 'track_running_stats',
             'eps', 'momentum'.
      t: python int timestep.
      training: bool, PyTorch self.training.

    Returns:
      y: (N, C, H, W) normalized output.
      (new_running_mean, new_running_var, new_num_batches_tracked): updated
        buffers (full tensors; only row t updated when temporal_stats).
    """
    bn_opts = state["bn_opts"]
    eps = float(state["eps"])
    momentum = state["momentum"]
    track_running_stats = state.get("track_running_stats", True)
    nbt = state.get("num_batches_tracked", None)
    t = min(int(t), bn_opts["n_timesteps"] - 1)

    N, C, H, W = x.shape
    HW = H * W
    L = N * HW

    # --- per-timestep parameter / buffer selection (tiny glue) -------------
    weight = state.get("weight", None)
    bias = state.get("bias", None)
    if weight is None:  # affine=False
        weight = jnp.ones((C,), jnp.float32)
        bias = jnp.zeros((C,), jnp.float32)
    elif bn_opts["temporal_affine"]:
        weight = weight[t]
        bias = bias[t]

    rm_full = state.get("running_mean", None)
    rv_full = state.get("running_var", None)
    if track_running_stats and rm_full is not None:
        if bn_opts["temporal_stats"]:
            running_mean = rm_full[t]
            running_var = rv_full[t]
        else:
            running_mean = rm_full
            running_var = rv_full
    else:
        running_mean = running_var = None

    # --- PyTorch exponential_average_factor semantics (incl. momentum=None)
    eaf = 0.0 if momentum is None else momentum
    new_nbt = nbt
    if training and track_running_stats and nbt is not None:
        new_nbt = nbt + 1
        if momentum is None:
            eaf = 1.0 / jnp.asarray(new_nbt, jnp.float32)  # cumulative average
        else:
            eaf = momentum

    use_batch_stats = training or not track_running_stats

    # --- layout: NCHW -> (N, C, H*W) is a free view (no HBM transpose) -----
    x3 = x.reshape(N, C, HW)

    hw_tile = _pick_hw_tile(HW)
    c_blk = _pick_c_block(C, x.dtype.itemsize)
    grid = (C // c_blk, N, HW // hw_tile)

    # channels on sublanes, reduction / elementwise axis on lanes
    x_spec = pl.BlockSpec((None, c_blk, hw_tile), lambda c, n, h: (n, c, h))
    vec_spec = pl.BlockSpec((c_blk, 1), lambda c, n, h: (c, 0))

    # --- stats pass (training / no-running-stats path) ---------------------
    if use_batch_stats:
        mean2, var2 = pl.pallas_call(
            functools.partial(_bn_stats_kernel, inv_l=1.0 / L),
            out_shape=(
                jax.ShapeDtypeStruct((C, 1), jnp.float32),
                jax.ShapeDtypeStruct((C, 1), jnp.float32),
            ),
            grid=grid,
            in_specs=[x_spec],
            out_specs=(vec_spec, vec_spec),
            scratch_shapes=[
                pltpu.VMEM((c_blk, hw_tile), jnp.float32),
                pltpu.VMEM((c_blk, hw_tile), jnp.float32),
            ],
            compiler_params=pltpu.CompilerParams(
                dimension_semantics=("parallel", "arbitrary", "arbitrary")),
        )(x3)
        mean = mean2[:, 0]
        var_b = var2[:, 0]
    else:
        mean = running_mean.astype(jnp.float32)
        var_b = running_var.astype(jnp.float32)

    # --- (C,)-sized fold of stats + affine into scale/shift (XLA, tiny) ----
    w_f32 = weight.astype(jnp.float32)
    inv_std = jax.lax.rsqrt(var_b + eps)
    scale = (w_f32 * inv_std).reshape(C, 1)
    shift = (bias.astype(jnp.float32) - mean * w_f32 * inv_std).reshape(C, 1)

    # --- apply pass (fully parallel, lane-dense output tiles) --------------
    y3 = pl.pallas_call(
        _bn_apply_kernel,
        out_shape=jax.ShapeDtypeStruct((N, C, HW), x.dtype),
        grid=grid,
        in_specs=[x_spec, vec_spec, vec_spec],
        out_specs=x_spec,
        compiler_params=pltpu.CompilerParams(
            dimension_semantics=("parallel", "parallel", "parallel")),
    )(x3, scale, shift)

    y = y3.reshape(N, C, H, W)  # free view back to NCHW

    # --- running-stat EMA update (PyTorch: unbiased batch variance) --------
    new_rm_full, new_rv_full = rm_full, rv_full
    if training and track_running_stats and running_mean is not None:
        if L <= 1:
            raise ValueError(
                "Expected more than 1 value per channel when training")
        var_unbiased = var_b * (L / (L - 1.0))
        new_rm = (1.0 - eaf) * running_mean + eaf * mean
        new_rv = (1.0 - eaf) * running_var + eaf * var_unbiased
        if bn_opts["temporal_stats"]:
            new_rm_full = rm_full.at[t].set(new_rm.astype(rm_full.dtype))
            new_rv_full = rv_full.at[t].set(new_rv.astype(rv_full.dtype))
        else:
            new_rm_full = new_rm.astype(rm_full.dtype)
            new_rv_full = new_rv.astype(rv_full.dtype)

    return y, (new_rm_full, new_rv_full, new_nbt)


# ---------------------------------------------------------------------------
# Pure-JAX reference (F.batch_norm semantics) for correctness checks.
# ---------------------------------------------------------------------------
def _reference(x, weight, bias, running_mean, running_var, eps, training):
    xf = x.astype(jnp.float32)
    if training:
        mean = jnp.mean(xf, axis=(0, 2, 3))
        var = jnp.var(xf, axis=(0, 2, 3))  # biased
    else:
        mean, var = running_mean, running_var
    inv = jax.lax.rsqrt(var + eps)
    y = (xf - mean[None, :, None, None]) * inv[None, :, None, None]
    y = y * weight[None, :, None, None] + bias[None, :, None, None]
    return y.astype(x.dtype)


if __name__ == "__main__":
    # ---------------- config 1: temporal affine + temporal stats -----------
    bn_opts = {"temporal_affine": True, "temporal_stats": True, "n_timesteps": 3}
    num_features = 4
    T = bn_opts["n_timesteps"]

    weight = jnp.ones((T, num_features), jnp.float32) + 0.1 * jnp.arange(
        T * num_features, dtype=jnp.float32).reshape(T, num_features)
    bias = jnp.zeros((T, num_features), jnp.float32) + 0.01 * jnp.arange(
        T * num_features, dtype=jnp.float32).reshape(T, num_features)
    running_mean = jnp.zeros((T, num_features), jnp.float32)
    running_var = jnp.ones((T, num_features), jnp.float32)

    state = {
        "bn_opts": bn_opts,
        "weight": weight,
        "bias": bias,
        "running_mean": running_mean,
        "running_var": running_var,
        "num_batches_tracked": jnp.array(0, jnp.int32),
        "track_running_stats": True,
        "eps": 1e-5,
        "momentum": 0.1,
    }

    key = jax.random.PRNGKey(0)
    k1, k2 = jax.random.split(key)
    x = jax.random.normal(k1, (2, 4, 16, 16), dtype=jnp.float32)
    t = 1
    L = x.shape[0] * x.shape[2] * x.shape[3]

    y_train, (new_rm, new_rv, new_nbt) = batch_norm_forward(
        x, state, t, training=True)
    jax.block_until_ready((y_train, new_rm, new_rv, new_nbt))
    y_eval, _ = batch_norm_forward(x, state, t, training=False)
    y_eval = jax.block_until_ready(y_eval)

    ref_train = _reference(x, weight[t], bias[t], running_mean[t],
                           running_var[t], state["eps"], training=True)
    ref_eval = _reference(x, weight[t], bias[t], running_mean[t],
                          running_var[t], state["eps"], training=False)
    assert jnp.allclose(y_train, ref_train, atol=1e-4, rtol=1e-5)
    assert jnp.allclose(y_eval, ref_eval, atol=1e-4, rtol=1e-5)

    # running-stat EMA check (PyTorch: unbiased batch variance in the EMA)
    mean_b = jnp.mean(x, axis=(0, 2, 3))
    var_b = jnp.var(x, axis=(0, 2, 3))
    m = state["momentum"]
    rm_ref = (1 - m) * running_mean[t] + m * mean_b
    rv_ref = (1 - m) * running_var[t] + m * var_b * (L / (L - 1))
    assert jnp.allclose(new_rm[t], rm_ref, atol=1e-5, rtol=1e-5)
    assert jnp.allclose(new_rv[t], rv_ref, atol=1e-5, rtol=1e-5)
    assert int(new_nbt) == 1

    # momentum=None -> cumulative moving average via num_batches_tracked
    state_none = dict(state)
    state_none["momentum"] = None
    state_none["num_batches_tracked"] = jnp.array(3, jnp.int32)
    _, (rm_n, rv_n, nbt_n) = batch_norm_forward(x, state_none, t, training=True)
    jax.block_until_ready((rm_n, rv_n))
    eaf = 1.0 / 4.0
    rm_ref_n = (1 - eaf) * running_mean[t] + eaf * mean_b
    rv_ref_n = (1 - eaf) * running_var[t] + eaf * var_b * (L / (L - 1))
    assert jnp.allclose(rm_n[t], rm_ref_n, atol=1e-5, rtol=1e-5)
    assert jnp.allclose(rv_n[t], rv_ref_n, atol=1e-5, rtol=1e-5)
    assert int(nbt_n) == 4

    # ---------------- config 2: non-temporal, multi-tile (C=48, HW=2304) ---
    bn_opts2 = {"temporal_affine": False, "temporal_stats": False,
                "n_timesteps": 1}
    C2 = 48
    x2 = jax.random.normal(k2, (2, C2, 48, 48), dtype=jnp.float32)
    w2 = 1.0 + 0.05 * jnp.arange(C2, dtype=jnp.float32)
    b2 = 0.02 * jnp.arange(C2, dtype=jnp.float32)
    state2 = {
        "bn_opts": bn_opts2,
        "weight": w2,
        "bias": b2,
        "running_mean": jnp.zeros((C2,), jnp.float32),
        "running_var": jnp.ones((C2,), jnp.float32),
        "num_batches_tracked": jnp.array(0, jnp.int32),
        "track_running_stats": True,
        "eps": 1e-5,
        "momentum": 0.1,
    }
    y2_train, _ = batch_norm_forward(x2, state2, 0, training=True)
    y2_eval, _ = batch_norm_forward(x2, state2, 0, training=False)
    jax.block_until_ready((y2_train, y2_eval))
    ref2_train = _reference(x2, w2, b2, state2["running_mean"],
                            state2["running_var"], 1e-5, training=True)
    ref2_eval = _reference(x2, w2, b2, state2["running_mean"],
                           state2["running_var"], 1e-5, training=False)
    assert jnp.allclose(y2_train, ref2_train, atol=1e-4, rtol=1e-5)
    assert jnp.allclose(y2_eval, ref2_eval, atol=1e-4, rtol=1e-5)

    print("KERNEL_OK")
</pallas_src>

<mosaic_0001>
module attributes {stable_mosaic.version = 11 : i64} {
  func.func @_bn_stats_kernel(%arg0: i32, %arg1: i32, %arg2: i32, %arg3: memref<1x4x256xf32, #tpu.memory_space<vmem>>, %arg4: memref<4x1xf32, #tpu.memory_space<vmem>>, %arg5: memref<4x1xf32, #tpu.memory_space<vmem>>, %arg6: memref<4x256xf32, #tpu.memory_space<vmem>>, %arg7: memref<4x256xf32, #tpu.memory_space<vmem>>) attributes {dimension_semantics = [#tpu.dimension_semantics<parallel>, #tpu.dimension_semantics<arbitrary>, #tpu.dimension_semantics<arbitrary>], iteration_bounds = array<i64: 1, 2, 1>, scalar_prefetch = 0 : i64, scratch_operands = 2 : i64, tpu.core_type = #tpu.core_type<tc>, window_params = [{transform_indices = @transform_0, window_bounds = array<i64: 1, 4, 256>}, {transform_indices = @transform_1, window_bounds = array<i64: 4, 1>}, {transform_indices = @transform_2, window_bounds = array<i64: 4, 1>}]} {
    %c1_i32 = arith.constant 1 : i32
    %0 = arith.muli %arg1, %c1_i32 : i32
    %1 = arith.addi %0, %arg2 : i32
    %c0 = arith.constant 0 : index
    %c0_0 = arith.constant 0 : index
    %c0_1 = arith.constant 0 : index
    %2 = vector.load %arg3[%c0, %c0_0, %c0_1] : memref<1x4x256xf32, #tpu.memory_space<vmem>>, vector<1x4x256xf32>
    %3 = vector.shape_cast %2 : vector<1x4x256xf32> to vector<4x256xf32>
    %c0_i32 = arith.constant 0 : i32
    %4 = arith.cmpi eq, %1, %c0_i32 : i32
    %5 = arith.extui %4 : i1 to i32
    %c0_i32_2 = arith.constant 0 : i32
    %6 = arith.cmpi ne, %5, %c0_i32_2 : i32
    scf.if %6 {
      %c0_7 = arith.constant 0 : index
      %c0_8 = arith.constant 0 : index
      %13 = vector.load %arg6[%c0_7, %c0_8] : memref<4x256xf32, #tpu.memory_space<vmem>>, vector<4x256xf32>
      tpu.vector_store %arg6[%c0_7, %c0_8], %3 {strides = array<i32>} : memref<4x256xf32, #tpu.memory_space<vmem>>, vector<4x256xf32>,
      %14 = arith.mulf %3, %3 : vector<4x256xf32>
      %c0_9 = arith.constant 0 : index
      %c0_10 = arith.constant 0 : index
      %15 = vector.load %arg7[%c0_9, %c0_10] : memref<4x256xf32, #tpu.memory_space<vmem>>, vector<4x256xf32>
      tpu.vector_store %arg7[%c0_9, %c0_10], %14 {strides = array<i32>} : memref<4x256xf32, #tpu.memory_space<vmem>>, vector<4x256xf32>,
    } else {
    }
    %c0_i32_3 = arith.constant 0 : i32
    %7 = arith.cmpi sgt, %1, %c0_i32_3 : i32
    %8 = arith.extui %7 : i1 to i32
    %c0_i32_4 = arith.constant 0 : i32
    %9 = arith.cmpi ne, %8, %c0_i32_4 : i32
    scf.if %9 {
      %c0_7 = arith.constant 0 : index
      %c0_8 = arith.constant 0 : index
      %13 = vector.load %arg6[%c0_7, %c0_8] : memref<4x256xf32, #tpu.memory_space<vmem>>, vector<4x256xf32>
      %14 = arith.addf %13, %3 : vector<4x256xf32>
      %c0_9 = arith.constant 0 : index
      %c0_10 = arith.constant 0 : index
      %15 = vector.load %arg6[%c0_9, %c0_10] : memref<4x256xf32, #tpu.memory_space<vmem>>, vector<4x256xf32>
      tpu.vector_store %arg6[%c0_9, %c0_10], %14 {strides = array<i32>} : memref<4x256xf32, #tpu.memory_space<vmem>>, vector<4x256xf32>,
      %c0_11 = arith.constant 0 : index
      %c0_12 = arith.constant 0 : index
      %16 = vector.load %arg7[%c0_11, %c0_12] : memref<4x256xf32, #tpu.memory_space<vmem>>, vector<4x256xf32>
      %17 = arith.mulf %3, %3 : vector<4x256xf32>
      %18 = arith.addf %16, %17 : vector<4x256xf32>
      %c0_13 = arith.constant 0 : index
      %c0_14 = arith.constant 0 : index
      %19 = vector.load %arg7[%c0_13, %c0_14] : memref<4x256xf32, #tpu.memory_space<vmem>>, vector<4x256xf32>
      tpu.vector_store %arg7[%c0_13, %c0_14], %18 {strides = array<i32>} : memref<4x256xf32, #tpu.memory_space<vmem>>, vector<4x256xf32>,
    } else {
    }
    %c1_i32_5 = arith.constant 1 : i32
    %10 = arith.cmpi eq, %1, %c1_i32_5 : i32
    %11 = arith.extui %10 : i1 to i32
    %c0_i32_6 = arith.constant 0 : i32
    %12 = arith.cmpi ne, %11, %c0_i32_6 : i32
    scf.if %12 {
      %c0_7 = arith.constant 0 : index
      %c0_8 = arith.constant 0 : index
      %13 = vector.load %arg6[%c0_7, %c0_8] : memref<4x256xf32, #tpu.memory_space<vmem>>, vector<4x256xf32>
      %cst = arith.constant dense<0.000000e+00> : vector<4xf32>
      %14 = vector.multi_reduction <add>, %13, %cst [1] : vector<4x256xf32> to vector<4xf32>
      %15 = vector.shape_cast %14 : vector<4xf32> to vector<4x1xf32>
      %cst_9 = arith.constant 0.001953125 : f32
      %16 = vector.broadcast %cst_9 : f32 to vector<4x1xf32>
      %17 = arith.mulf %15, %16 : vector<4x1xf32>
      %c0_10 = arith.constant 0 : index
      %c0_11 = arith.constant 0 : index
      %18 = vector.load %arg7[%c0_10, %c0_11] : memref<4x256xf32, #tpu.memory_space<vmem>>, vector<4x256xf32>
      %cst_12 = arith.constant dense<0.000000e+00> : vector<4xf32>
      %19 = vector.multi_reduction <add>, %18, %cst_12 [1] : vector<4x256xf32> to vector<4xf32>
      %20 = vector.shape_cast %19 : vector<4xf32> to vector<4x1xf32>
      %cst_13 = arith.constant 0.001953125 : f32
      %21 = vector.broadcast %cst_13 : f32 to vector<4x1xf32>
      %22 = arith.mulf %20, %21 : vector<4x1xf32>
      %c0_14 = arith.constant 0 : index
      %c0_15 = arith.constant 0 : index
      %23 = vector.load %arg4[%c0_14, %c0_15] : memref<4x1xf32, #tpu.memory_space<vmem>>, vector<4x1xf32>
      tpu.vector_store %arg4[%c0_14, %c0_15], %17 {strides = array<i32>} : memref<4x1xf32, #tpu.memory_space<vmem>>, vector<4x1xf32>,
      %24 = arith.mulf %17, %17 : vector<4x1xf32>
      %25 = arith.subf %22, %24 : vector<4x1xf32>
      %cst_16 = arith.constant 0.000000e+00 : f32
      %26 = vector.broadcast %cst_16 : f32 to vector<4x1xf32>
      %27 = arith.maximumf %25, %26 : vector<4x1xf32>
      %c0_17 = arith.constant 0 : index
      %c0_18 = arith.constant 0 : index
      %28 = vector.load %arg5[%c0_17, %c0_18] : memref<4x1xf32, #tpu.memory_space<vmem>>, vector<4x1xf32>
      tpu.vector_store %arg5[%c0_17, %c0_18], %27 {strides = array<i32>} : memref<4x1xf32, #tpu.memory_space<vmem>>, vector<4x1xf32>,
    } else {
    }
    return
  }
  func.func @transform_0(%arg0: i32, %arg1: i32, %arg2: i32) -> (i32, i32, i32) {
    %c0_i32 = arith.constant 0 : i32
    return %arg1, %arg0, %arg2 : i32, i32, i32
  }
  func.func @transform_1(%arg0: i32, %arg1: i32, %arg2: i32) -> (i32, i32) {
    %c0_i32 = arith.constant 0 : i32
    %c0_i32_0 = arith.constant 0 : i32
    return %arg0, %c0_i32 : i32, i32
  }
  func.func @transform_2(%arg0: i32, %arg1: i32, %arg2: i32) -> (i32, i32) {
    %c0_i32 = arith.constant 0 : i32
    %c0_i32_0 = arith.constant 0 : i32
    return %arg0, %c0_i32 : i32, i32
  }
}

</mosaic_0001>

<bundles_post_ra>
// kernel: tpu_custom_call.1
= control target key start
LH: loop header
LB: loop body
LE: loop exit
PB: predicated region body
PF: predicated region fallthrough
CT: control target
= control target key end

     0   :  { %8 = vsyncpa [#allocation5], 0  ;;  %s656_s0 = inlined_call_operand.hbm [shape: f32[2,4,256], index: 0, kind: input, shape index: {}]   ;;  %s657_s1 = inlined_call_operand.vmem [shape: f32[4,1], index: 1, kind: output, shape index: {0}]   ;;  %s658_s2 = inlined_call_operand.vmem [shape: f32[4,1], index: 2, kind: output, shape index: {1}]  }
   0x1   :  { %10 = vsyncpa [#allocation5 + $0x1], 0  ;;  %s527_s9 = smov 0   ;;  %s529_s10 = smov 0  }
   0x2   :  { %s531_s11 = smov 0   ;;  %s533_s12 = smov 0  }
   0x3   :  { %s535_s13 = smov 0   ;;  %s537_s14 = smov 0  }
   0x4 LB: > { %s356_s15 = sadd.s32 4294967295, %s509_s14   ;;  %s31_s16 = sadd.s32 1, %s505_s13  ;;  %s509_s14 = sphi %s537_s14, %s16_s14   ;;  %s505_s13 = sphi %s535_s13, %s668_s13   ;;  %s501_s12 = sphi %s533_s12, %s667_s12   ;;  %s497_s11 = sphi %s531_s11, %s666_s11   ;;  %s493_s10 = sphi %s529_s10, %s665_s10   ;;  %s489_s9 = sphi %s527_s9, %s664_s9  }
   0x5   : > { %p33_p0 = scmp.ge.s32.totalorder %s31_s16, 2  ;;  %s46_s17 = sadd.s32 1, %s497_s11 }
   0x6   : > { %p53_p1 = scmp.ne.s32.totalorder %s497_s11, %s493_s10  ;;  %p54_p2 = scmp.eq.s32.totalorder %s509_s14, 0 }
   0x7   : > { %s670_s16 = smov (%p33_p0, %s31_s16), 0  ;;  %p59_p4 = scmp.ne.s32.totalorder %s493_s10, %s489_s9 }
   0x8   : > { %p563_p3 = por %p54_p2, %p53_p1  ;;  %s39_s19 = ssub.s32 %s505_s13, %s670_s16 }
   0x9   : > { %p60_p5 = scmp.eq.s32.totalorder %s356_s15, 0  ;;  %p44_p6 = scmp.eq.s32.totalorder %s39_s19, 0 }
   0xa   : > { %p378_p8 = scmp.lt.s32.totalorder %s509_s14, 2  ;;  %s135_s22 = sand.u32 1, %s497_s11  }
   0xb   : > { %p570_p7 = por %p60_p5, %p59_p4  ;;  %s371_s23 = sshll.u32 %s505_s13, 7 }
   0xc   : > { %s576_s21 = scalar_select %p44_p6, %s497_s11, %s46_s17  }
   0xd   : > { %s359_s24 = sshll.u32 %s135_s22, 3  ;;  %s583_s27 = scalar_lea.hbm %s656_s0, %s371_s23 }
   0xe   : > { %s139_s28 = scalar_lea.vmem [#allocation4], %s359_s24  ;;  %p587_p9 = pnand %p378_p8, %p563_p3 }
   0xf   : > { %s151_s29 = sshll.u32 %s139_s28, 4  ;;  %s136_s3 = scalar_lea.sflag [#allocation5], %s135_s22  ;;  %s591_s29 = int_to_ptr.vmem [resolvable:$true] %s151_s29 }
  0x10   : > { %s429_s4 = scalar_lea.hbm %s583_s27, 128  ;;  %p431_p13 = pneg %p587_p9 }
  0x11   : > { %p430_p12 = scmp.ne.s32.totalorder %s583_s27, %s429_s4  ;;  %s434_s7 = scalar_lea.hbm %s656_s0, 256 }
  0x12   : > { %p435_p2 = scmp.lt.u32.totalorder %s583_s27, %s656_s0  ;;  %p436_p3 = scmp.lt.u32.totalorder %s434_s7, %s429_s4 }
  0x13   : > { %p432_p0 = pnand %p431_p13, %p430_p12  ;;  %p438_p5 = scmp.lt.u32.totalorder %s429_s4, %s583_s27 }
  0x14   : > { %p437_p4 = por %p436_p3, %p435_p2 }
  0x15   : > { %p433_p1 = pneg %p432_p0 }
  0x16   : > { %p439_p6 = por %p438_p5, %p437_p4 }
  0x18   : > { %p440_p8 = pnand %p439_p6, %p433_p1 }
  0x1a   : > { %443 = shalt.err (!%p440_p8)
}
  0x1b   : > { %s444_s15 = scalar_lea.vmem %s591_s29, 128  ;;  %s511_s17 = smov [#allocation4]  }
  0x1c   : > { %p445_p12 = scmp.ne.s32.totalorder %s591_s29, %s444_s15  ;;  %s449_s18 = sshll.u32 %s511_s17, 4  ;;  %s450_s18 = int_to_ptr.vmem [resolvable:$false] %s449_s18 }
  0x1d   : > { %s451_s19 = scalar_lea.vmem %s450_s18, 256  ;;  %p452_p11 = scmp.lt.s32.totalorder %s591_s29, %s450_s18 }
  0x1e   : > { %p447_p0 = pnand %p445_p12, %p431_p13  ;;  %p453_p2 = scmp.lt.s32.totalorder %s451_s19, %s444_s15 }
  0x20   : > { %p448_p10 = pneg %p447_p0  ;;  %p454_p3 = por %p453_p2, %p452_p11 }
  0x22   : > { %p455_p4 = pnand %p454_p3, %p448_p10 }
  0x24   : > { %458 = shalt.err (!%p455_p4)
}
  0x25   : > { %377 = dma.hbm_to_vmem [thread:$0]  (!%p587_p9), %s583_s27, 128, %s591_s29, %s136_s3  }
  0x26   : > { %p662_p1 = scmp.lt.s32.totalorder %s509_s14, 3  ;;  %p663_p5 = scmp.ge.s32.totalorder %s509_s14, 1 }
  0x28   : > { %p157_p13 = pnand %p663_p5, %p662_p1 }
  0x29   : > { %s162_s22 = sand.u32 (!%p157_p13), 1, %s493_s10  }
  0x2a   : > { %160 = sbr.rel (%p157_p13) target bundleno = 229 (0xe5), region = 24  ;;  %s363_s23 = sshll.u32 (!%p157_p13), %s162_s22, 3 }
  0x2b   : > { %s163_s24 = scalar_lea.sflag (!%p157_p13), [#allocation5], %s162_s22  ;;  %s166_s25 = scalar_lea.vmem (!%p157_p13), [#allocation4], %s363_s23 }
  0x31   : > { %484 = dma.done.wait (%p570_p7), %s163_s24, 128  }
  0x32   : > { %486 = vsyncadd (%p570_p7), %s163_s24, 4294967168  ;;  %v200_v0 = vld [vmem:[%s166_s25] sm:$0xff]  ;;  %p364_p10 = scmp.ne.s32.totalorder %s501_s12, 0 }
  0x33   : > { %205 = vst [vmem:[#allocation2] sm:$0xff] (!%p364_p10), %v200_v0  ;;  %v206_v1 = vmul.f32 (!%p364_p10), %v200_v0, %v200_v0 }
  0x34   : > { %204 = sbr.rel (%p364_p10) target bundleno = 59 (0x3b), region = 32 }
  0x35   : > { %207 = vst [vmem:[#allocation3] sm:$0xff] (!%p364_p10), %v206_v1 }
  0x3b PF: > { %p365_p9 = scmp.le.s32.totalorder %s501_s12, 0 }
  0x3c   : > { %v212_v2 = vld [vmem:[#allocation2] sm:$0xff] (!%p365_p9)  ;;  %v215_v3 = vld [vmem:[#allocation3] sm:$0xff] (!%p365_p9)  ;;  %v216_v4 = vmul.f32 (!%p365_p9), %v200_v0, %v200_v0 }
  0x3d   : > { %211 = sbr.rel (%p365_p9) target bundleno = 68 (0x44), region = 36  ;;  %v213_v5 = vadd.f32 (!%p365_p9), %v212_v2, %v200_v0 }
  0x3e   : > { %v217_v6 = vadd.f32 (!%p365_p9), %v216_v4, %v215_v3 }
  0x3f   : > { %214 = vst [vmem:[#allocation2] sm:$0xff] (!%p365_p9), %v213_v5 }
  0x40   : > { %218 = vst [vmem:[#allocation3] sm:$0xff] (!%p365_p9), %v217_v6 }
  0x44 PF: > { %p366_p7 = scmp.ne.s32.totalorder %s501_s12, 1 }
  0x45   : > { %vm227_vm0 = vcmask (!%p366_p7), 1043456   ;;  %vm244_vm1 = vcmask (!%p366_p7), 3072  }
  0x46   : > { %222 = sbr.rel (%p366_p7) target bundleno = 229 (0xe5), region = 40  ;;  %v223_v7 = vld [vmem:[#allocation2] sm:$0xff] (!%p366_p7) }
  0x47   : > { %v234_v8 = vld [vmem:[#allocation3] sm:$0xff] (!%p366_p7)  ;;  %v225_v9 = vcombine.high (!%p366_p7), %v223_v7, %v223_v7  ;;  %v228_v10 = vsel (!%p366_p7), %vm227_vm0, %v223_v7, 0.0 }
  0x48   : > { %v236_v11 = vcombine.high (!%p366_p7), %v234_v8, %v234_v8  ;;  %v238_v13 = vsel (!%p366_p7), %vm227_vm0, %v234_v8, 0.0 }
  0x49   : > { %v229_v12 = vsel (!%p366_p7), %vm227_vm0, %v225_v9, 0.0 }
  0x4a   : > { %v239_v14 = vsel (!%p366_p7), %vm227_vm0, %v236_v11, 0.0  ;;  %v230_v15 = vadd.f32 (!%p366_p7), %v229_v12, %v228_v10 }
  0x4b   : > { %v240_v16 = vadd.f32 (!%p366_p7), %v239_v14, %v238_v13 }
  0x4c   : > { %231 = vadd.xlane.f32.xlu0 (!%p366_p7), %v230_v15 }
  0x50   : > { %241 = vadd.xlane.f32.xlu0 %v240_v16 }
  0xd9   : > { %v232_v17 = vpop.xlane.xlu0 %231 }
  0xda   : > { %v233_v18 = vmul.f32 0.001953125, %v232_v17 }
  0xdc   : > { %245 = vst.msk [vmem:[%s657_s1] sm:$0xf] %vm244_vm1, %v233_v18  ;;  %v246_v20 = vmul.f32 %v233_v18, %v233_v18 }
  0xdd   : > { %v242_v19 = vpop.xlane.xlu0 %241 }
  0xde   : > { %v243_v21 = vmul.f32 0.001953125, %v242_v19 }
  0xe0   : > { %v247_v22 = vsub.f32 %v243_v21, %v246_v20 }
  0xe2   : > { %v248_v23 = vmax.f32 %v247_v22, 0.0 }
  0xe4   : > { %249 = vst.msk [vmem:[%s658_s2] sm:$0xf] %vm244_vm1, %v248_v23 }
  0xe5 PF: > { %s16_s14 = sadd.s32 1, %s509_s14   ;;  %s664_s9 = smov %s493_s10 }
  0xe6   : > { %p13_p11 = scmp.ge.s32.totalorder %s16_s14, 4   ;;  %s665_s10 = smov %s497_s11 }
  0xe7   : > { %s666_s11 = smov %s576_s21  ;;  %s667_s12 = smov %s505_s13 }
  0xe8   : > { %s668_s13 = smov %s670_s16  ;;  %15 = sbr.rel (!%p13_p11) target bundleno = 4 (0x4), region = 88 }
  0xef   :  { %283 = vsyncpa [#allocation5], 1 }
  0xf0   :  { %285 = vsyncpa [#allocation5 + $0x1], 1 }

</bundles_post_ra>
